<compile_context>
chip_gen: v7x
topology: tpu7x:2x2x1
jax: 0.10.0
libtpu: 0.0.40
codegen_flags: <defaults>
</compile_context>

<pallas_src>
import jax
import jax.numpy as jnp
from jax.experimental import pallas as pl
from jax.experimental.pallas import tpu as pltpu


_LANES = 128
_SUBLANES = 8
_MIN_ROW_BLOCK = _LANES * _SUBLANES  # 1024 atoms -> one (8, 128) tile


# ---------------------------------------------------------------------------
# Pallas kernel: per lane-dense block of atoms, gather self energies.
# ---------------------------------------------------------------------------
def _ase_gather_kernel(idx_ref, table_ref, out_ref):
    idx = idx_ref[...]                       # (R, 128) int32, atoms lane-dense
    table = table_ref[...]                   # (Zpad, 1) f32, table sublane-dense
    zpad = table.shape[0]
    # One-hot over the sublane axis:
    #   hit[r, z, a] = (idx[r, a] == z)   -> (R, Zpad, 128)
    # Atom indices keep their lane layout (only a sublane-singleton broadcast),
    # the table broadcasts each sublane value across all 128 lanes, and the
    # reduction over axis=1 (sublanes) lands directly in the lane-dense
    # (R, 128) output layout -> the final store is an unmasked full-lane vst.
    z_col = jax.lax.broadcasted_iota(jnp.int32, (1, zpad, 1), 1)    # (1,Zpad,1)
    hit = idx[:, None, :] == z_col                                  # (R,Zpad,128)
    sel = jnp.where(hit, table.reshape(1, zpad, 1), jnp.float32(0.0))
    out_ref[...] = jnp.sum(sel, axis=1)                             # (R,128)


def ase_gather(atomic_numbers: jax.Array, ase_table_col: jax.Array,
               *, row_block: int = 4096) -> jax.Array:
    """Pallas equivalent of ase_table[atomic_numbers].

    atomic_numbers: (N,) integer array
    ase_table_col:  (Zpad, 1) float32 table, Zpad a multiple of 128
    returns:        (N,) float32
    """
    n = atomic_numbers.shape[0]
    z_pad = ase_table_col.shape[0]

    # Round row_block to a multiple of 1024 (so the row-dim of each block is
    # a multiple of 8 sublanes) and clamp it so tiny inputs don't pad to a
    # huge block.
    row_block = pl.cdiv(row_block, _MIN_ROW_BLOCK) * _MIN_ROW_BLOCK
    row_block = max(_MIN_ROW_BLOCK,
                    min(row_block, pl.cdiv(n, _MIN_ROW_BLOCK) * _MIN_ROW_BLOCK))

    n_pad = pl.cdiv(n, row_block) * row_block
    rows = n_pad // _LANES          # total lane-dense rows
    r_blk = row_block // _LANES     # rows per grid step (multiple of 8)

    # Single pad + reshape: padded slots are 0 -> gather table[0] == 0.0 and
    # are sliced off below anyway.
    idx = jnp.pad(atomic_numbers.astype(jnp.int32),
                  (0, n_pad - n)).reshape(rows, _LANES)

    cost = pl.CostEstimate(
        flops=3 * n_pad * z_pad,          # compare + select + add per table slot
        transcendentals=0,
        bytes_accessed=8 * n_pad + 4 * z_pad,
    )

    out = pl.pallas_call(
        _ase_gather_kernel,
        out_shape=jax.ShapeDtypeStruct((rows, _LANES), jnp.float32),
        grid_spec=pl.GridSpec(
            grid=(n_pad // row_block,),
            in_specs=[
                pl.BlockSpec((r_blk, _LANES), lambda i: (i, 0)),  # atom indices
                pl.BlockSpec((z_pad, 1), lambda i: (0, 0)),       # full table
            ],
            out_specs=pl.BlockSpec((r_blk, _LANES), lambda i: (i, 0)),
        ),
        compiler_params=pltpu.CompilerParams(
            dimension_semantics=("parallel",)),
        cost_estimate=cost,
    )(idx, ase_table_col)

    return out.reshape(n_pad)[:n]


# ---------------------------------------------------------------------------
# Module-equivalent wrapper.
# ---------------------------------------------------------------------------
class CalculateAtomicSelfEnergy:
    """JAX/Pallas port of modelforge CalculateAtomicSelfEnergy.

    atomic_self_energies: dict mapping atomic number -> self energy (float,
    already in kJ/mol).  The pint/unit handling of the original module is
    host-side glue and is assumed done ahead of time.
    """

    MAX_Z = 119  # max atomic number (118) + 1, as in the torch module

    def __init__(self, atomic_self_energies):
        z_pad = pl.cdiv(self.MAX_Z, _LANES) * _LANES  # -> 128
        table = [0.0] * z_pad
        for z_num, energy in atomic_self_energies.items():
            table[int(z_num)] = float(energy)
        # 1D table (torch-equivalent attribute) ...
        self.ase_tensor_for_indexing = jnp.asarray(
            table[:self.MAX_Z], dtype=jnp.float32)
        # ... and the pre-padded, sublane-dense (Zpad, 1) column the kernel
        # consumes, built once at init time (no per-call padding glue).
        # NOTE: out-of-range / negative atomic numbers silently gather 0.0
        # instead of raising like torch indexing would.
        self._ase_table_col = jnp.asarray(
            table, dtype=jnp.float32).reshape(z_pad, 1)

    def __call__(self, data):
        atomic_numbers = data["atomic_numbers"]
        # torch casts atomic_subsystem_indices to long; JAX/TPU uses int32.
        # TODO(synk): int64 subsystem indices not preserved (int32 on TPU).
        data["atomic_subsystem_indices"] = data[
            "atomic_subsystem_indices"].astype(jnp.int32)
        data["ase_tensor"] = ase_gather(atomic_numbers, self._ase_table_col)
        return data


if __name__ == "__main__":
    key = jax.random.PRNGKey(0)

    # Deterministic synthetic self energies (kJ/mol) for H, C, N, O.
    atomic_self_energies = {1: -1313.4668, 6: -99366.41, 7: -143309.92,
                            8: -197082.06}
    module = CalculateAtomicSelfEnergy(atomic_self_energies)

    # Small batch: 2 molecules, 20 atoms total, elements drawn from {1,6,7,8}.
    n_atoms = 20
    elem_choices = jnp.array([1, 6, 7, 8], dtype=jnp.int32)
    k1, _ = jax.random.split(key)
    atomic_numbers = elem_choices[jax.random.randint(k1, (n_atoms,), 0, 4)]
    atomic_subsystem_indices = jnp.concatenate(
        [jnp.zeros((12,), jnp.int32), jnp.ones((8,), jnp.int32)])

    data = {
        "atomic_numbers": atomic_numbers,
        "atomic_subsystem_indices": atomic_subsystem_indices,
    }

    out = module(data)
    ase = jax.block_until_ready(out["ase_tensor"])

    # Reference check against a plain-JAX gather.
    ref = module.ase_tensor_for_indexing[atomic_numbers]
    assert ase.shape == atomic_numbers.shape
    assert ase.dtype == jnp.float32
    assert jnp.allclose(ase, ref), (ase, ref)

    print("KERNEL_OK")
</pallas_src>

<mosaic_0001>
module attributes {stable_mosaic.version = 11 : i64} {
  func.func @_ase_gather_kernel(%arg0: i32, %arg1: memref<8x128xi32, #tpu.memory_space<vmem>>, %arg2: memref<128x1xf32, #tpu.memory_space<vmem>>, %arg3: memref<8x128xf32, #tpu.memory_space<vmem>>) attributes {dimension_semantics = [#tpu.dimension_semantics<parallel>], iteration_bounds = array<i64: 1>, scalar_prefetch = 0 : i64, scratch_operands = 0 : i64, tpu.core_type = #tpu.core_type<tc>, window_params = [{transform_indices = @transform_0, window_bounds = array<i64: 8, 128>}, {pipeline_mode = #tpu.pipeline_mode<synchronous>, transform_indices = @transform_1, window_bounds = array<i64: 128, 1>}, {transform_indices = @transform_2, window_bounds = array<i64: 8, 128>}]} {
    %c0 = arith.constant 0 : index
    %c0_0 = arith.constant 0 : index
    %0 = vector.load %arg1[%c0, %c0_0] : memref<8x128xi32, #tpu.memory_space<vmem>>, vector<8x128xi32>
    %c0_1 = arith.constant 0 : index
    %c0_2 = arith.constant 0 : index
    %1 = vector.load %arg2[%c0_1, %c0_2] : memref<128x1xf32, #tpu.memory_space<vmem>>, vector<128x1xf32>
    %2 = tpu.iota {dimensions = array<i32: 1>} : vector<1x128x1xi32>
    %3 = vector.shape_cast %0 : vector<8x128xi32> to vector<8x1x128xi32>
    %4 = vector.broadcast %3 : vector<8x1x128xi32> to vector<8x128x128xi32>
    %5 = vector.broadcast %2 : vector<1x128x1xi32> to vector<8x128x128xi32>
    %6 = arith.cmpi eq, %4, %5 : vector<8x128x128xi32>
    %7 = vector.shape_cast %1 : vector<128x1xf32> to vector<1x128x1xf32>
    %cst = arith.constant 0.000000e+00 : f32
    %8 = vector.shape_cast %7 : vector<1x128x1xf32> to vector<1x128x1xf32>
    %9 = vector.broadcast %8 : vector<1x128x1xf32> to vector<8x128x128xf32>
    %10 = vector.broadcast %cst : f32 to vector<8x128x128xf32>
    %11 = arith.select %6, %9, %10 : vector<8x128x128xi1>, vector<8x128x128xf32>
    %cst_3 = arith.constant dense<0.000000e+00> : vector<8x128xf32>
    %12 = vector.multi_reduction <add>, %11, %cst_3 [1] : vector<8x128x128xf32> to vector<8x128xf32>
    %c0_4 = arith.constant 0 : index
    %c0_5 = arith.constant 0 : index
    %13 = vector.load %arg3[%c0_4, %c0_5] : memref<8x128xf32, #tpu.memory_space<vmem>>, vector<8x128xf32>
    tpu.vector_store %arg3[%c0_4, %c0_5], %12 {strides = array<i32>} : memref<8x128xf32, #tpu.memory_space<vmem>>, vector<8x128xf32>,
    return
  }
  func.func @transform_0(%arg0: i32) -> (i32, i32) {
    %c0_i32 = arith.constant 0 : i32
    %c0_i32_0 = arith.constant 0 : i32
    return %arg0, %c0_i32 : i32, i32
  }
  func.func @transform_1(%arg0: i32) -> (i32, i32) {
    %c0_i32 = arith.constant 0 : i32
    %c0_i32_0 = arith.constant 0 : i32
    %c0_i32_1 = arith.constant 0 : i32
    return %c0_i32, %c0_i32_0 : i32, i32
  }
  func.func @transform_2(%arg0: i32) -> (i32, i32) {
    %c0_i32 = arith.constant 0 : i32
    %c0_i32_0 = arith.constant 0 : i32
    return %arg0, %c0_i32 : i32, i32
  }
}

</mosaic_0001>

<bundles_post_ra>
// kernel: tpu_custom_call.1
= control target key start
LH: loop header
LB: loop body
LE: loop exit
PB: predicated region body
PF: predicated region fallthrough
CT: control target
= control target key end

     0   :  { %v699_v2 = vmov 0   ;;  %s1662_s0 = inlined_call_operand.vmem [shape: s32[8,128], index: 0, kind: input, shape index: {}]   ;;  %s1663_s1 = inlined_call_operand.vmem [shape: f32[128,1], index: 1, kind: input, shape index: {}]   ;;  %s1664_s2 = inlined_call_operand.hbm [shape: f32[8,128], index: 2, kind: output, shape index: {}]  }
   0x1   :  { %v15_v0 = vld [vmem:[%s1663_s1 + $0x10] sm:$0xff]  ;;  %v13_v1 = vld [vmem:[%s1663_s1] sm:$0xff]  ;;  %673 = vset.pattern.permute.xlu1 %v699_v2  ;;  %672 = vset.pattern.permute.xlu0 %v699_v2  ;;  %v16_v3 = vld [vmem:[%s1663_s1 + $0x18] sm:$0xff] }
   0x2   :  { %267 = vperm.xlu1 %673, %v15_v0   ;;  %257 = vperm.xlu0 %672, %v13_v1   ;;  %v14_v4 = vld [vmem:[%s1663_s1 + $0x8] sm:$0xff] }
   0x3   :  { %7 = vsyncpa [#allocation3], 0  ;;  %v18_v5 = vld [vmem:[%s1663_s1 + $0x28] sm:$0xff]  ;;  %v17_v6 = vld [vmem:[%s1663_s1 + $0x20] sm:$0xff]  ;;  %v29_v17 = vlaneseq  ;;  %v700_v18 = vmov 1966171168  }
   0x4   :  { %v20_v7 = vld [vmem:[%s1663_s1 + $0x38] sm:$0xff]  ;;  %v19_v8 = vld [vmem:[%s1663_s1 + $0x30] sm:$0xff]  ;;  %v22_v9 = vld [vmem:[%s1663_s1 + $0x48] sm:$0xff]  ;;  %v48_v19 = vunpack.c.l.s4 %v700_v18 }
   0x5   :  { %v21_v10 = vld [vmem:[%s1663_s1 + $0x40] sm:$0xff]  ;;  %v24_v11 = vld [vmem:[%s1663_s1 + $0x58] sm:$0xff]  ;;  %v23_v12 = vld [vmem:[%s1663_s1 + $0x50] sm:$0xff]  ;;  %v765_v20 = vshrl.u32 %v29_v17, 7 }
   0x6   :  { %272 = vperm.xlu1 %673, %v16_v3   ;;  %262 = vperm.xlu0 %672, %v14_v4   ;;  %v26_v13 = vld [vmem:[%s1663_s1 + $0x68] sm:$0xff]  ;;  %v25_v14 = vld [vmem:[%s1663_s1 + $0x60] sm:$0xff]  ;;  %v28_v15 = vld [vmem:[%s1663_s1 + $0x78] sm:$0xff]  ;;  %v49_v21 = vunpack.c.0.s8 %v48_v19 }
   0x7   :  { %v27_v16 = vld [vmem:[%s1663_s1 + $0x70] sm:$0xff]  ;;  %v12_v22 = vld [vmem:[%s1662_s0] sm:$0xff]  ;;  %v97_v33 = vsub.s32 0, %v765_v20  ;;  %v773_v37 = vadd.s32 16, %v765_v20  ;;  %v776_v39 = vadd.s32 24, %v765_v20  ;;  %v779_v40 = vadd.s32 8, %v765_v20 }
   0x8   :  { %v52_v23 = vsub.s32 %v49_v21, %v765_v20  ;;  %v46_v24 = vcombine.high %v12_v22, %v12_v22  ;;  %v788_v44 = vadd.s32 40, %v765_v20  ;;  %v805_v50 = vadd.s32 32, %v765_v20  ;;  %s701_s0 = smov [#allocation2]  }
   0x9   :  { %v862_v51 = vadd.s32 56, %v765_v20  ;;  %v871_v52 = vadd.s32 48, %v765_v20  ;;  %v874_v53 = vadd.s32 72, %v765_v20  ;;  %v877_v54 = vadd.s32 64, %v765_v20  ;;  %s661_s1 = sshll.u32 %s701_s0, 4  ;;  %s662_s1 = int_to_ptr.vmem [resolvable:$true] %s661_s1 }
   0xa   :  { %282 = vperm.xlu1 %673, %v18_v5   ;;  %277 = vperm.xlu0 %672, %v17_v6   ;;  %v53_v25 = vrot.slane %v12_v22, %v52_v23  ;;  %v60_v26 = vrot.slane %v46_v24, %v52_v23  ;;  %v880_v55 = vadd.s32 88, %v765_v20  ;;  %v883_v56 = vadd.s32 80, %v765_v20  ;;  %s675_s15 = scalar_lea.vmem %s662_s1, 128  ;;  %p680_p1 = scmp.lt.s32.totalorder %s662_s1, %s662_s1 }
   0xb   :  { %v886_v59 = vadd.s32 96, %v765_v20  ;;  %v889_v60 = vadd.s32 120, %v765_v20  ;;  %v892_v61 = vadd.s32 104, %v765_v20  ;;  %v895_v62 = vadd.s32 112, %v765_v20  ;;  %p676_p0 = scmp.ne.s32.totalorder %s662_s1, %s675_s15  ;;  %p681_p2 = scmp.lt.s32.totalorder %s675_s15, %s675_s15 }
   0xc   :  { %v61_v27 = vcombine.high %v53_v25, %v53_v25  ;;  %v62_v28 = vcombine.high %v60_v26, %v60_v26  ;;  %v69_v29 = vrot.slane %v53_v25, %v52_v23  ;;  %v76_v30 = vrot.slane %v60_v26, %v52_v23 }
   0xd   :  { %p682_p3 = por %p681_p2, %p680_p1 }
   0xe   :  { %292 = vperm.xlu1 %673, %v20_v7   ;;  %287 = vperm.xlu0 %672, %v19_v8   ;;  %v83_v31 = vrot.slane %v61_v27, %v52_v23  ;;  %v90_v32 = vrot.slane %v62_v28, %v52_v23  ;;  %v91_v34 = vcombine.high %v69_v29, %v69_v29 }
   0xf   :  { %v92_v35 = vcombine.high %v76_v30, %v76_v30  ;;  %v781_v41 = vrot.slane %v69_v29, %v97_v33  ;;  %v792_v46 = vrot.slane %v76_v30, %v97_v33  ;;  %p683_p4 = pnand %p682_p3, %p676_p0 }
  0x10   :  { %v93_v36 = vcombine.high %v83_v31, %v83_v31  ;;  %v94_v38 = vcombine.high %v90_v32, %v90_v32  ;;  %v783_v42 = vrot.slane %v83_v31, %v97_v33  ;;  %v785_v43 = vrot.slane %v91_v34, %v97_v33 }
  0x11   :  { %v794_v47 = vrot.slane %v90_v32, %v97_v33  ;;  %v796_v48 = vrot.slane %v92_v35, %v97_v33  ;;  %vm129_vm0 = vcmp.eq.s32.totalorder %v781_v41, %v773_v37  ;;  %vm193_vm3 = vcmp.eq.s32.totalorder %v792_v46, %v773_v37 }
  0x12   :  { %302 = vperm.xlu1 %673, %v22_v9   ;;  %297 = vperm.xlu0 %672, %v21_v10   ;;  %v790_v45 = vrot.slane %v93_v36, %v97_v33  ;;  %v798_v49 = vrot.slane %v94_v38, %v97_v33  ;;  %vm145_vm1 = vcmp.eq.s32.totalorder %v783_v42, %v773_v37 }
  0x13   :  { %vm161_vm2 = vcmp.eq.s32.totalorder %v785_v43, %v773_v37  ;;  %vm209_vm4 = vcmp.eq.s32.totalorder %v794_v47, %v773_v37  ;;  %vm225_vm5 = vcmp.eq.s32.totalorder %v796_v48, %v773_v37  ;;  %vm127_vm7 = vcmp.eq.s32.totalorder %v781_v41, %v765_v20 }
  0x14   :  { %vm177_vm6 = vcmp.eq.s32.totalorder %v790_v45, %v773_v37  ;;  %vm241_vm10 = vcmp.eq.s32.totalorder %v798_v49, %v773_v37  ;;  %vm226_vm15 = vcmp.eq.s32.totalorder %v796_v48, %v776_v39  ;;  %vm160_vm12 = vcmp.eq.s32.totalorder %v785_v43, %v779_v40 }
  0x15   :  { %vm176_vm13 = vcmp.eq.s32.totalorder %v790_v45, %v779_v40  ;;  %vm192_vm14 = vcmp.eq.s32.totalorder %v792_v46, %v779_v40  ;;  %vm208_vm9 = vcmp.eq.s32.totalorder %v794_v47, %v779_v40  ;;  %vm224_vm8 = vcmp.eq.s32.totalorder %v796_v48, %v779_v40 }
  0x16   :  { %312 = vperm.xlu1 %673, %v24_v11   ;;  %307 = vperm.xlu0 %672, %v23_v12   ;;  %vm240_vm11 = vcmp.eq.s32.totalorder %v798_v49, %v779_v40 }
  0x1a   :  { %322 = vperm.xlu1 %673, %v26_v13   ;;  %317 = vperm.xlu0 %672, %v25_v14  }
  0x1e   :  { %332 = vperm.xlu1 %673, %v28_v15   ;;  %327 = vperm.xlu0 %672, %v27_v16  }
  0x81   :  { %v268_v57 = vpop.permute.xlu1 %267  ;;  %v258_v58 = vpop.permute.xlu0 %257 }
  0x82   :  { %v900_v63 = vsel %vm129_vm0, %v268_v57, 0.0  ;;  %v905_v0 = vsel %vm145_vm1, %v268_v57, 0.0  ;;  %v910_v1 = vsel %vm161_vm2, %v268_v57, 0.0  ;;  %v915_v2 = vsel %vm177_vm6, %v268_v57, 0.0 }
  0x83   :  { %v920_v3 = vsel %vm193_vm3, %v268_v57, 0.0  ;;  %v925_v4 = vsel %vm209_vm4, %v268_v57, 0.0  ;;  %v930_v5 = vsel %vm225_vm5, %v268_v57, 0.0  ;;  %v935_v6 = vsel %vm241_vm10, %v268_v57, 0.0 }
  0x84   :  { %vm132_vm0 = vcmp.eq.s32.totalorder %v781_v41, %v788_v44  ;;  %vm148_vm1 = vcmp.eq.s32.totalorder %v783_v42, %v788_v44  ;;  %v335_v7 = vsel %vm127_vm7, %v258_v58, 0.0  ;;  %vm1665_vm4 = vcmp.eq.s32.totalorder %v783_v42, %v765_v20 }
  0x85   :  { %v351_v8 = vsel %vm1665_vm4, %v258_v58, 0.0  ;;  %vm1666_vm5 = vcmp.eq.s32.totalorder %v785_v43, %v765_v20  ;;  %vm1667_vm6 = vcmp.eq.s32.totalorder %v790_v45, %v765_v20  ;;  %vm196_vm10 = vcmp.eq.s32.totalorder %v792_v46, %v788_v44  ;;  %v273_v15 = vpop.permute.xlu1 %272  ;;  %v263_v16 = vpop.permute.xlu0 %262 }
  0x86   :  { %v367_v9 = vsel %vm1666_vm5, %v258_v58, 0.0  ;;  %v383_v10 = vsel %vm1667_vm6, %v258_v58, 0.0  ;;  %vm1668_vm2 = vcmp.eq.s32.totalorder %v792_v46, %v765_v20  ;;  %vm1669_vm5 = vcmp.eq.s32.totalorder %v794_v47, %v765_v20 }
  0x87   :  { %v399_v11 = vsel %vm1668_vm2, %v258_v58, 0.0  ;;  %v415_v12 = vsel %vm1669_vm5, %v258_v58, 0.0  ;;  %vm1670_vm6 = vcmp.eq.s32.totalorder %v796_v48, %v765_v20  ;;  %vm1671_vm3 = vcmp.eq.s32.totalorder %v798_v49, %v765_v20 }
  0x88   :  { %v431_v13 = vsel %vm1670_vm6, %v258_v58, 0.0  ;;  %v447_v14 = vsel %vm1671_vm3, %v258_v58, 0.0  ;;  %vm1672_vm6 = vcmp.eq.s32.totalorder %v781_v41, %v776_v39  ;;  %vm1673_vm3 = vcmp.eq.s32.totalorder %v783_v42, %v776_v39 }
  0x89   :  { %v988_v17 = vsel %vm1672_vm6, %v273_v15, 0.0  ;;  %v993_v18 = vsel %vm1673_vm3, %v273_v15, 0.0  ;;  %vm1674_vm4 = vcmp.eq.s32.totalorder %v785_v43, %v776_v39  ;;  %vm1675_vm7 = vcmp.eq.s32.totalorder %v790_v45, %v776_v39  ;;  %v283_v58 = vpop.permute.xlu1 %282 }
  0x8a   :  { %v998_v19 = vsel %vm1674_vm4, %v273_v15, 0.0  ;;  %v1003_v20 = vsel %vm1675_vm7, %v273_v15, 0.0  ;;  %vm195_vm5 = vcmp.eq.s32.totalorder %v792_v46, %v805_v50  ;;  %vm211_vm6 = vcmp.eq.s32.totalorder %v794_v47, %v805_v50 }
  0x8b   :  { %vm1676_vm4 = vcmp.eq.s32.totalorder %v792_v46, %v776_v39  ;;  %vm1677_vm7 = vcmp.eq.s32.totalorder %v794_v47, %v776_v39  ;;  %v1026_v23 = vsel %vm226_vm15, %v273_v15, 0.0  ;;  %vm1678_vm3 = vcmp.eq.s32.totalorder %v798_v49, %v776_v39 }
  0x8c   :  { %v1016_v21 = vsel %vm1676_vm4, %v273_v15, 0.0  ;;  %v1021_v22 = vsel %vm1677_vm7, %v273_v15, 0.0  ;;  %v1031_v24 = vsel %vm1678_vm3, %v273_v15, 0.0  ;;  %vm1679_vm2 = vcmp.eq.s32.totalorder %v781_v41, %v779_v40 }
  0x8d   :  { %v336_v25 = vsel %vm1679_vm2, %v263_v16, 0.0  ;;  %vm1680_vm4 = vcmp.eq.s32.totalorder %v783_v42, %v779_v40  ;;  %v368_v27 = vsel %vm160_vm12, %v263_v16, 0.0  ;;  %v384_v28 = vsel %vm176_vm13, %v263_v16, 0.0 }
  0x8e   :  { %v352_v26 = vsel %vm1680_vm4, %v263_v16, 0.0  ;;  %v400_v29 = vsel %vm192_vm14, %v263_v16, 0.0  ;;  %v416_v30 = vsel %vm208_vm9, %v263_v16, 0.0  ;;  %v432_v31 = vsel %vm224_vm8, %v263_v16, 0.0 }
  0x8f   :  { %v448_v32 = vsel %vm240_vm11, %v263_v16, 0.0  ;;  %v463_v33 = vadd.f32 %v336_v25, %v335_v7  ;;  %v484_v34 = vadd.f32 %v352_v26, %v351_v8  ;;  %v505_v35 = vadd.f32 %v368_v27, %v367_v9 }
  0x90   :  { %v526_v36 = vadd.f32 %v384_v28, %v383_v10  ;;  %v547_v37 = vadd.f32 %v400_v29, %v399_v11  ;;  %v568_v38 = vadd.f32 %v416_v30, %v415_v12  ;;  %v589_v39 = vadd.f32 %v432_v31, %v431_v13  ;;  %v278_v10 = vpop.permute.xlu0 %277 }
  0x91   :  { %v610_v57 = vadd.f32 %v448_v32, %v447_v14  ;;  %vm134_vm9 = vcmp.eq.s32.totalorder %v781_v41, %v862_v51  ;;  %vm150_vm12 = vcmp.eq.s32.totalorder %v783_v42, %v862_v51  ;;  %vm166_vm8 = vcmp.eq.s32.totalorder %v785_v43, %v862_v51 }
  0x92   :  { %vm182_vm11 = vcmp.eq.s32.totalorder %v790_v45, %v862_v51  ;;  %v464_v40 = vadd.f32 %v463_v33, %v900_v63  ;;  %v485_v7 = vadd.f32 %v484_v34, %v905_v0  ;;  %v506_v8 = vadd.f32 %v505_v35, %v910_v1 }
  0x93   :  { %v527_v9 = vadd.f32 %v526_v36, %v915_v2  ;;  %vm198_vm13 = vcmp.eq.s32.totalorder %v792_v46, %v862_v51  ;;  %vm214_vm14 = vcmp.eq.s32.totalorder %v794_v47, %v862_v51  ;;  %vm230_vm15 = vcmp.eq.s32.totalorder %v796_v48, %v862_v51 }
  0x94   :  { %v548_v63 = vadd.f32 %v547_v37, %v920_v3  ;;  %v569_v0 = vadd.f32 %v568_v38, %v925_v4  ;;  %v590_v1 = vadd.f32 %v589_v39, %v930_v5  ;;  %v611_v2 = vadd.f32 %v610_v57, %v935_v6  ;;  %v293_v38 = vpop.permute.xlu1 %292 }
  0x95   :  { %v1092_v3 = vsel %vm132_vm0, %v283_v58, 0.0  ;;  %v1097_v4 = vsel %vm148_vm1, %v283_v58, 0.0  ;;  %vm1681_vm3 = vcmp.eq.s32.totalorder %v785_v43, %v788_v44  ;;  %vm1682_vm4 = vcmp.eq.s32.totalorder %v790_v45, %v788_v44 }
  0x96   :  { %v1102_v5 = vsel %vm1681_vm3, %v283_v58, 0.0  ;;  %v1107_v6 = vsel %vm1682_vm4, %v283_v58, 0.0  ;;  %vm197_vm2 = vcmp.eq.s32.totalorder %v792_v46, %v871_v52  ;;  %vm213_vm0 = vcmp.eq.s32.totalorder %v794_v47, %v871_v52 }
  0x97   :  { %v1120_v11 = vsel %vm196_vm10, %v283_v58, 0.0  ;;  %vm1683_vm3 = vcmp.eq.s32.totalorder %v794_v47, %v788_v44  ;;  %vm1684_vm4 = vcmp.eq.s32.totalorder %v796_v48, %v788_v44  ;;  %vm1685_vm1 = vcmp.eq.s32.totalorder %v798_v49, %v788_v44 }
  0x98   :  { %v1125_v12 = vsel %vm1683_vm3, %v283_v58, 0.0  ;;  %v1130_v13 = vsel %vm1684_vm4, %v283_v58, 0.0  ;;  %v1135_v14 = vsel %vm1685_vm1, %v283_v58, 0.0  ;;  %vm1686_vm7 = vcmp.eq.s32.totalorder %v781_v41, %v805_v50 }
  0x99   :  { %v339_v15 = vsel %vm1686_vm7, %v278_v10, 0.0  ;;  %vm1687_vm10 = vcmp.eq.s32.totalorder %v783_v42, %v805_v50  ;;  %vm1688_vm3 = vcmp.eq.s32.totalorder %v785_v43, %v805_v50  ;;  %vm1689_vm4 = vcmp.eq.s32.totalorder %v790_v45, %v805_v50 }
  0x9a   :  { %v355_v16 = vsel %vm1687_vm10, %v278_v10, 0.0  ;;  %v371_v25 = vsel %vm1688_vm3, %v278_v10, 0.0  ;;  %v387_v26 = vsel %vm1689_vm4, %v278_v10, 0.0  ;;  %v403_v44 = vsel %vm195_vm5, %v278_v10, 0.0 }
  0x9b   :  { %v419_v27 = vsel %vm211_vm6, %v278_v10, 0.0  ;;  %vm1690_vm7 = vcmp.eq.s32.totalorder %v796_v48, %v805_v50  ;;  %vm1691_vm1 = vcmp.eq.s32.totalorder %v798_v49, %v805_v50  ;;  %v465_v30 = vadd.f32 %v464_v40, %v988_v17 }
  0x9c   :  { %v435_v28 = vsel %vm1690_vm7, %v278_v10, 0.0  ;;  %v451_v29 = vsel %vm1691_vm1, %v278_v10, 0.0  ;;  %v486_v31 = vadd.f32 %v485_v7, %v993_v18  ;;  %v507_v32 = vadd.f32 %v506_v8, %v998_v19 }
  0x9d   :  { %v528_v33 = vadd.f32 %v527_v9, %v1003_v20  ;;  %v549_v34 = vadd.f32 %v548_v63, %v1016_v21  ;;  %v570_v35 = vadd.f32 %v569_v0, %v1021_v22  ;;  %v591_v36 = vadd.f32 %v590_v1, %v1026_v23 }
  0x9e   :  { %v612_v37 = vadd.f32 %v611_v2, %v1031_v24  ;;  %vm136_vm5 = vcmp.eq.s32.totalorder %v781_v41, %v874_v53  ;;  %vm168_vm10 = vcmp.eq.s32.totalorder %v785_v43, %v874_v53  ;;  %v466_v50 = vadd.f32 %v465_v30, %v339_v15  ;;  %v288_v24 = vpop.permute.xlu0 %287 }
  0x9f   :  { %v487_v17 = vadd.f32 %v486_v31, %v355_v16  ;;  %v508_v18 = vadd.f32 %v507_v32, %v371_v25  ;;  %v529_v19 = vadd.f32 %v528_v33, %v387_v26  ;;  %vm248_vm6 = vcmp.eq.s32.totalorder %v798_v49, %v874_v53 }
  0xa0   :  { %v550_v20 = vadd.f32 %v549_v34, %v403_v44  ;;  %v571_v21 = vadd.f32 %v570_v35, %v419_v27  ;;  %v592_v22 = vadd.f32 %v591_v36, %v435_v28  ;;  %v613_v23 = vadd.f32 %v612_v37, %v451_v29  ;;  %v303_v29 = vpop.permute.xlu1 %302 }
  0xa1   :  { %vm135_vm3 = vcmp.eq.s32.totalorder %v781_v41, %v877_v54  ;;  %vm151_vm4 = vcmp.eq.s32.totalorder %v783_v42, %v877_v54  ;;  %v1196_v39 = vsel %vm134_vm9, %v293_v38, 0.0  ;;  %v1201_v57 = vsel %vm150_vm12, %v293_v38, 0.0 }
  0xa2   :  { %v1206_v58 = vsel %vm166_vm8, %v293_v38, 0.0  ;;  %v1211_v40 = vsel %vm182_vm11, %v293_v38, 0.0  ;;  %vm199_vm1 = vcmp.eq.s32.totalorder %v792_v46, %v877_v54  ;;  %vm215_vm9 = vcmp.eq.s32.totalorder %v794_v47, %v877_v54 }
  0xa3   :  { %vm231_vm12 = vcmp.eq.s32.totalorder %v796_v48, %v877_v54  ;;  %vm247_vm7 = vcmp.eq.s32.totalorder %v798_v49, %v877_v54  ;;  %v1224_v7 = vsel %vm198_vm13, %v293_v38, 0.0  ;;  %v1229_v8 = vsel %vm214_vm14, %v293_v38, 0.0 }
  0xa4   :  { %v1234_v9 = vsel %vm230_vm15, %v293_v38, 0.0  ;;  %vm1692_vm8 = vcmp.eq.s32.totalorder %v798_v49, %v862_v51  ;;  %vm1693_vm11 = vcmp.eq.s32.totalorder %v781_v41, %v871_v52  ;;  %vm1694_vm13 = vcmp.eq.s32.totalorder %v783_v42, %v871_v52 }
  0xa5   :  { %v1239_v63 = vsel %vm1692_vm8, %v293_v38, 0.0  ;;  %v341_v0 = vsel %vm1693_vm11, %v288_v24, 0.0  ;;  %v357_v1 = vsel %vm1694_vm13, %v288_v24, 0.0  ;;  %vm1695_vm14 = vcmp.eq.s32.totalorder %v785_v43, %v871_v52 }
  0xa6   :  { %v373_v2 = vsel %vm1695_vm14, %v288_v24, 0.0  ;;  %vm1696_vm15 = vcmp.eq.s32.totalorder %v790_v45, %v871_v52  ;;  %v405_v51 = vsel %vm197_vm2, %v288_v24, 0.0  ;;  %v421_v15 = vsel %vm213_vm0, %v288_v24, 0.0 }
  0xa7   :  { %v389_v10 = vsel %vm1696_vm15, %v288_v24, 0.0  ;;  %vm1697_vm8 = vcmp.eq.s32.totalorder %v796_v48, %v871_v52  ;;  %vm1698_vm11 = vcmp.eq.s32.totalorder %v798_v49, %v871_v52  ;;  %v467_v26 = vadd.f32 %v466_v50, %v1092_v3 }
  0xa8   :  { %v437_v16 = vsel %vm1697_vm8, %v288_v24, 0.0  ;;  %v453_v25 = vsel %vm1698_vm11, %v288_v24, 0.0  ;;  %v488_v44 = vadd.f32 %v487_v17, %v1097_v4  ;;  %v509_v27 = vadd.f32 %v508_v18, %v1102_v5 }
  0xa9   :  { %v530_v28 = vadd.f32 %v529_v19, %v1107_v6  ;;  %v551_v30 = vadd.f32 %v550_v20, %v1120_v11  ;;  %v572_v31 = vadd.f32 %v571_v21, %v1125_v12  ;;  %v593_v32 = vadd.f32 %v592_v22, %v1130_v13  ;;  %v298_v6 = vpop.permute.xlu0 %297 }
  0xaa   :  { %v614_v33 = vadd.f32 %v613_v23, %v1135_v14  ;;  %vm138_vm2 = vcmp.eq.s32.totalorder %v781_v41, %v880_v55  ;;  %v468_v52 = vadd.f32 %v467_v26, %v341_v0  ;;  %v489_v3 = vadd.f32 %v488_v44, %v357_v1  ;;  %v313_v23 = vpop.permute.xlu1 %312 }
  0xab   :  { %v510_v4 = vadd.f32 %v509_v27, %v373_v2  ;;  %v531_v5 = vadd.f32 %v530_v28, %v389_v10  ;;  %vm234_vm11 = vcmp.eq.s32.totalorder %v796_v48, %v880_v55  ;;  %v552_v11 = vadd.f32 %v551_v30, %v405_v51 }
  0xac   :  { %v573_v12 = vadd.f32 %v572_v31, %v421_v15  ;;  %v594_v13 = vadd.f32 %v593_v32, %v437_v16  ;;  %v615_v14 = vadd.f32 %v614_v33, %v453_v25  ;;  %vm137_vm14 = vcmp.eq.s32.totalorder %v781_v41, %v883_v56 }
  0xad   :  { %v1300_v34 = vsel %vm136_vm5, %v303_v29, 0.0  ;;  %vm1699_vm13 = vcmp.eq.s32.totalorder %v783_v42, %v874_v53  ;;  %v1310_v36 = vsel %vm168_vm10, %v303_v29, 0.0  ;;  %vm1700_vm15 = vcmp.eq.s32.totalorder %v790_v45, %v874_v53  ;;  %v308_v16 = vpop.permute.xlu0 %307 }
  0xae   :  { %v1305_v35 = vsel %vm1699_vm13, %v303_v29, 0.0  ;;  %v1315_v37 = vsel %vm1700_vm15, %v303_v29, 0.0  ;;  %vm217_vm5 = vcmp.eq.s32.totalorder %v794_v47, %v883_v56  ;;  %vm233_vm13 = vcmp.eq.s32.totalorder %v796_v48, %v883_v56  ;;  %v1421_v31 = vpop.permute.xlu1 %322 }
  0xaf   :  { %vm249_vm0 = vcmp.eq.s32.totalorder %v798_v49, %v883_v56  ;;  %vm1701_vm10 = vcmp.eq.s32.totalorder %v792_v46, %v874_v53  ;;  %vm1702_vm15 = vcmp.eq.s32.totalorder %v794_v47, %v874_v53  ;;  %vm1703_vm8 = vcmp.eq.s32.totalorder %v796_v48, %v874_v53 }
  0xb0   :  { %v1328_v38 = vsel %vm1701_vm10, %v303_v29, 0.0  ;;  %v1333_v50 = vsel %vm1702_vm15, %v303_v29, 0.0  ;;  %v1338_v17 = vsel %vm1703_vm8, %v303_v29, 0.0  ;;  %v1343_v18 = vsel %vm248_vm6, %v303_v29, 0.0 }
  0xb1   :  { %v343_v19 = vsel %vm135_vm3, %v298_v6, 0.0  ;;  %v359_v20 = vsel %vm151_vm4, %v298_v6, 0.0  ;;  %vm1704_vm10 = vcmp.eq.s32.totalorder %v785_v43, %v877_v54  ;;  %vm1705_vm8 = vcmp.eq.s32.totalorder %v790_v45, %v877_v54 }
  0xb2   :  { %v375_v21 = vsel %vm1704_vm10, %v298_v6, 0.0  ;;  %v391_v22 = vsel %vm1705_vm8, %v298_v6, 0.0  ;;  %v407_v53 = vsel %vm199_vm1, %v298_v6, 0.0  ;;  %v423_v24 = vsel %vm215_vm9, %v298_v6, 0.0 }
  0xb3   :  { %v439_v0 = vsel %vm231_vm12, %v298_v6, 0.0  ;;  %v455_v1 = vsel %vm247_vm7, %v298_v6, 0.0  ;;  %v469_v2 = vadd.f32 %v468_v52, %v1196_v39  ;;  %v490_v10 = vadd.f32 %v489_v3, %v1201_v57 }
  0xb4   :  { %v511_v51 = vadd.f32 %v510_v4, %v1206_v58  ;;  %v532_v15 = vadd.f32 %v531_v5, %v1211_v40  ;;  %v553_v25 = vadd.f32 %v552_v11, %v1224_v7  ;;  %v574_v26 = vadd.f32 %v573_v12, %v1229_v8  ;;  %v1471_v11 = vpop.permute.xlu0 %317 }
  0xb5   :  { %v595_v44 = vadd.f32 %v594_v13, %v1234_v9  ;;  %v616_v27 = vadd.f32 %v615_v14, %v1239_v63  ;;  %vm139_vm6 = vcmp.eq.s32.totalorder %v781_v41, %v886_v59  ;;  %vm155_vm3 = vcmp.eq.s32.totalorder %v783_v42, %v886_v59 }
  0xb6   :  { %vm171_vm4 = vcmp.eq.s32.totalorder %v785_v43, %v886_v59  ;;  %vm187_vm7 = vcmp.eq.s32.totalorder %v790_v45, %v886_v59  ;;  %v470_v54 = vadd.f32 %v469_v2, %v343_v19  ;;  %v491_v39 = vadd.f32 %v490_v10, %v359_v20 }
  0xb7   :  { %v512_v57 = vadd.f32 %v511_v51, %v375_v21  ;;  %v533_v58 = vadd.f32 %v532_v15, %v391_v22  ;;  %vm235_vm12 = vcmp.eq.s32.totalorder %v796_v48, %v886_v59  ;;  %v554_v40 = vadd.f32 %v553_v25, %v407_v53 }
  0xb8   :  { %v575_v7 = vadd.f32 %v574_v26, %v423_v24  ;;  %v596_v8 = vadd.f32 %v595_v44, %v439_v0  ;;  %v617_v9 = vadd.f32 %v616_v27, %v455_v1  ;;  %v1404_v63 = vsel %vm138_vm2, %v313_v23, 0.0 }
  0xb9   :  { %vm1706_vm15 = vcmp.eq.s32.totalorder %v783_v42, %v880_v55  ;;  %vm1707_vm10 = vcmp.eq.s32.totalorder %v785_v43, %v880_v55  ;;  %vm1708_vm1 = vcmp.eq.s32.totalorder %v790_v45, %v880_v55  ;;  %vm222_vm2 = vcmp.eq.s32.totalorder %v794_v47, %v889_v60 }
  0xba   :  { %v1409_v28 = vsel %vm1706_vm15, %v313_v23, 0.0  ;;  %v1414_v29 = vsel %vm1707_vm10, %v313_v23, 0.0  ;;  %v1419_v30 = vsel %vm1708_vm1, %v313_v23, 0.0  ;;  %vm1709_vm8 = vcmp.eq.s32.totalorder %v792_v46, %v880_v55 }
  0xbb   :  { %v1434_v32 = vsel %vm1709_vm8, %v313_v23, 0.0  ;;  %vm1710_vm1 = vcmp.eq.s32.totalorder %v794_v47, %v880_v55  ;;  %v1444_v52 = vsel %vm234_vm11, %v313_v23, 0.0  ;;  %vm1711_vm15 = vcmp.eq.s32.totalorder %v798_v49, %v880_v55 }
  0xbc   :  { %v1439_v33 = vsel %vm1710_vm1, %v313_v23, 0.0  ;;  %v1449_v3 = vsel %vm1711_vm15, %v313_v23, 0.0  ;;  %vm156_vm10 = vcmp.eq.s32.totalorder %v783_v42, %v892_v61  ;;  %v345_v4 = vsel %vm137_vm14, %v308_v16, 0.0 }
  0xbd   :  { %vm1712_vm11 = vcmp.eq.s32.totalorder %v783_v42, %v883_v56  ;;  %vm1713_vm15 = vcmp.eq.s32.totalorder %v785_v43, %v883_v56  ;;  %vm1714_vm8 = vcmp.eq.s32.totalorder %v790_v45, %v883_v56  ;;  %vm188_vm9 = vcmp.eq.s32.totalorder %v790_v45, %v892_v61 }
  0xbe   :  { %v361_v55 = vsel %vm1712_vm11, %v308_v16, 0.0  ;;  %v377_v5 = vsel %vm1713_vm15, %v308_v16, 0.0  ;;  %v393_v6 = vsel %vm1714_vm8, %v308_v16, 0.0  ;;  %vm189_vm14 = vcmp.eq.s32.totalorder %v790_v45, %v895_v62 }
  0xbf   :  { %vm204_vm1 = vcmp.eq.s32.totalorder %v792_v46, %v892_v61  ;;  %vm1715_vm15 = vcmp.eq.s32.totalorder %v792_v46, %v883_v56  ;;  %v425_v13 = vsel %vm217_vm5, %v308_v16, 0.0  ;;  %v441_v14 = vsel %vm233_vm13, %v308_v16, 0.0 }
  0xc0   :  { %v409_v12 = vsel %vm1715_vm15, %v308_v16, 0.0  ;;  %v457_v19 = vsel %vm249_vm0, %v308_v16, 0.0  ;;  %vm220_vm8 = vcmp.eq.s32.totalorder %v794_v47, %v892_v61  ;;  %vm221_vm11 = vcmp.eq.s32.totalorder %v794_v47, %v895_v62  ;;  %v328_v16 = vpop.permute.xlu0 %327 }
  0xc1   :  { %vm236_vm15 = vcmp.eq.s32.totalorder %v796_v48, %v892_v61  ;;  %vm237_vm5 = vcmp.eq.s32.totalorder %v796_v48, %v895_v62  ;;  %v471_v20 = vadd.f32 %v470_v54, %v1300_v34  ;;  %v492_v21 = vadd.f32 %v491_v39, %v1305_v35  ;;  %v1511_v35 = vpop.permute.xlu1 %332 }
  0xc2   :  { %v513_v22 = vadd.f32 %v512_v57, %v1310_v36  ;;  %v534_v56 = vadd.f32 %v533_v58, %v1315_v37  ;;  %v555_v23 = vadd.f32 %v554_v40, %v1328_v38  ;;  %v576_v53 = vadd.f32 %v575_v7, %v1333_v50 }
  0xc3   :  { %v597_v24 = vadd.f32 %v596_v8, %v1338_v17  ;;  %v618_v0 = vadd.f32 %v617_v9, %v1343_v18  ;;  %vm251_vm0 = vcmp.eq.s32.totalorder %v798_v49, %v886_v59  ;;  %v472_v1 = vadd.f32 %v471_v20, %v345_v4 }
  0xc4   :  { %v493_v2 = vadd.f32 %v492_v21, %v361_v55  ;;  %v514_v34 = vadd.f32 %v513_v22, %v377_v5  ;;  %v535_v10 = vadd.f32 %v534_v56, %v393_v6  ;;  %v556_v36 = vadd.f32 %v555_v23, %v409_v12 }
  0xc5   :  { %v577_v51 = vadd.f32 %v576_v53, %v425_v13  ;;  %v598_v37 = vadd.f32 %v597_v24, %v441_v14  ;;  %v1513_v15 = vadd.f32 %v618_v0, %v457_v19  ;;  %vm252_vm13 = vcmp.eq.s32.totalorder %v798_v49, %v892_v61 }
  0xc6   :  { %v347_v38 = vsel %vm139_vm6, %v1471_v11, 0.0  ;;  %v363_v50 = vsel %vm155_vm3, %v1471_v11, 0.0  ;;  %v379_v17 = vsel %vm171_vm4, %v1471_v11, 0.0  ;;  %v395_v18 = vsel %vm187_vm7, %v1471_v11, 0.0 }
  0xc7   :  { %vm1716_vm6 = vcmp.eq.s32.totalorder %v792_v46, %v886_v59  ;;  %vm1717_vm3 = vcmp.eq.s32.totalorder %v794_v47, %v886_v59  ;;  %v443_v44 = vsel %vm235_vm12, %v1471_v11, 0.0  ;;  %vm1718_vm4 = vcmp.eq.s32.totalorder %v781_v41, %v889_v60 }
  0xc8   :  { %v411_v25 = vsel %vm1716_vm6, %v1471_v11, 0.0  ;;  %v427_v26 = vsel %vm1717_vm3, %v1471_v11, 0.0  ;;  %v350_v27 = vsel %vm1718_vm4, %v1511_v35, 0.0  ;;  %vm253_vm7 = vcmp.eq.s32.totalorder %v798_v49, %v895_v62 }
  0xc9   :  { %vm1719_vm6 = vcmp.eq.s32.totalorder %v783_v42, %v889_v60  ;;  %vm1720_vm3 = vcmp.eq.s32.totalorder %v785_v43, %v889_v60  ;;  %vm1721_vm12 = vcmp.eq.s32.totalorder %v790_v45, %v889_v60  ;;  %vm1722_vm4 = vcmp.eq.s32.totalorder %v792_v46, %v889_v60 }
  0xca   :  { %v366_v54 = vsel %vm1719_vm6, %v1511_v35, 0.0  ;;  %v382_v39 = vsel %vm1720_vm3, %v1511_v35, 0.0  ;;  %v398_v57 = vsel %vm1721_vm12, %v1511_v35, 0.0  ;;  %v414_v58 = vsel %vm1722_vm4, %v1511_v35, 0.0 }
  0xcb   :  { %v430_v40 = vsel %vm222_vm2, %v1511_v35, 0.0  ;;  %vm1723_vm6 = vcmp.eq.s32.totalorder %v796_v48, %v889_v60  ;;  %vm1724_vm3 = vcmp.eq.s32.totalorder %v781_v41, %v892_v61  ;;  %vm1725_vm12 = vcmp.eq.s32.totalorder %v781_v41, %v895_v62 }
  0xcc   :  { %v446_v7 = vsel %vm1723_vm6, %v1511_v35, 0.0  ;;  %v348_v8 = vsel %vm1724_vm3, %v1421_v31, 0.0  ;;  %v349_v9 = vsel %vm1725_vm12, %v328_v16, 0.0  ;;  %vm254_vm4 = vcmp.eq.s32.totalorder %v798_v49, %v889_v60 }
  0xcd   :  { %v364_v4 = vsel %vm156_vm10, %v1421_v31, 0.0  ;;  %vm1726_vm2 = vcmp.eq.s32.totalorder %v783_v42, %v895_v62  ;;  %vm1727_vm6 = vcmp.eq.s32.totalorder %v785_v43, %v892_v61  ;;  %vm1728_vm3 = vcmp.eq.s32.totalorder %v785_v43, %v895_v62 }
  0xce   :  { %v365_v55 = vsel %vm1726_vm2, %v328_v16, 0.0  ;;  %v380_v5 = vsel %vm1727_vm6, %v1421_v31, 0.0  ;;  %v381_v41 = vsel %vm1728_vm3, %v328_v16, 0.0  ;;  %v396_v6 = vsel %vm188_vm9, %v1421_v31, 0.0 }
  0xcf   :  { %v397_v12 = vsel %vm189_vm14, %v328_v16, 0.0  ;;  %v412_v42 = vsel %vm204_vm1, %v1421_v31, 0.0  ;;  %vm1729_vm10 = vcmp.eq.s32.totalorder %v792_v46, %v895_v62  ;;  %v428_v43 = vsel %vm220_vm8, %v1421_v31, 0.0 }
  0xd0   :  { %v413_v13 = vsel %vm1729_vm10, %v328_v16, 0.0  ;;  %v429_v14 = vsel %vm221_vm11, %v328_v16, 0.0  ;;  %v444_v45 = vsel %vm236_vm15, %v1421_v31, 0.0  ;;  %v445_v19 = vsel %vm237_vm5, %v328_v16, 0.0 }
  0xd1   :  { %v473_v46 = vadd.f32 %v472_v1, %v1404_v63  ;;  %v494_v20 = vadd.f32 %v493_v2, %v1409_v28  ;;  %v515_v21 = vadd.f32 %v514_v34, %v1414_v29  ;;  %v536_v22 = vadd.f32 %v535_v10, %v1419_v30 }
  0xd2   :  { %v557_v47 = vadd.f32 %v556_v36, %v1434_v32  ;;  %v578_v56 = vadd.f32 %v577_v51, %v1439_v33  ;;  %v599_v23 = vadd.f32 %v598_v37, %v1444_v52  ;;  %v459_v48 = vsel %vm251_vm0, %v1471_v11, 0.0 }
  0xd3   :  { %v474_v53 = vadd.f32 %v473_v46, %v347_v38  ;;  %v495_v24 = vadd.f32 %v494_v20, %v363_v50  ;;  %v516_v63 = vadd.f32 %v515_v21, %v379_v17  ;;  %v537_v0 = vadd.f32 %v536_v22, %v395_v18 }
  0xd4   :  { %v558_v28 = vadd.f32 %v557_v47, %v411_v25  ;;  %v579_v1 = vadd.f32 %v578_v56, %v427_v26  ;;  %v600_v29 = vadd.f32 %v599_v23, %v443_v44  ;;  %v460_v30 = vsel %vm252_vm13, %v1421_v31, 0.0 }
  0xd5   :  { %v475_v32 = vadd.f32 %v474_v53, %v348_v8  ;;  %v496_v33 = vadd.f32 %v495_v24, %v364_v4  ;;  %v517_v52 = vadd.f32 %v516_v63, %v380_v5  ;;  %v538_v2 = vadd.f32 %v537_v0, %v396_v6 }
  0xd6   :  { %v559_v34 = vadd.f32 %v558_v28, %v412_v42  ;;  %v580_v10 = vadd.f32 %v579_v1, %v428_v43  ;;  %v601_v59 = vadd.f32 %v600_v29, %v444_v45  ;;  %v461_v11 = vsel %vm253_vm7, %v328_v16, 0.0 }
  0xd7   :  { %v476_v36 = vadd.f32 %v475_v32, %v349_v9  ;;  %v497_v51 = vadd.f32 %v496_v33, %v365_v55  ;;  %v518_v37 = vadd.f32 %v517_v52, %v381_v41  ;;  %v539_v38 = vadd.f32 %v538_v2, %v397_v12 }
  0xd8   :  { %v560_v50 = vadd.f32 %v559_v34, %v413_v13  ;;  %v581_v17 = vadd.f32 %v580_v10, %v429_v14  ;;  %v602_v18 = vadd.f32 %v601_v59, %v445_v19  ;;  %v462_v61 = vsel %vm254_vm4, %v1511_v35, 0.0 }
  0xd9   :  { %v477_v31 = vadd.f32 %v476_v36, %v350_v27  ;;  %v498_v25 = vadd.f32 %v497_v51, %v366_v54  ;;  %v519_v26 = vadd.f32 %v518_v37, %v382_v39  ;;  %v540_v44 = vadd.f32 %v539_v38, %v398_v57 }
  0xda   :  { %v561_v8 = vadd.f32 %v560_v50, %v414_v58  ;;  %v582_v4 = vadd.f32 %v581_v17, %v430_v40  ;;  %v603_v62 = vadd.f32 %v602_v18, %v446_v7  ;;  %v620_v16 = vadd.f32 %v1513_v15, %v1449_v3 }
  0xdb   :  { %v478_v9 = vrot.slane %v477_v31, 4  ;;  %v499_v55 = vrot.slane %v498_v25, 4  ;;  %v520_v5 = vrot.slane %v519_v26, 4  ;;  %v541_v41 = vrot.slane %v540_v44, 4 }
  0xdc   :  { %v562_v6 = vrot.slane %v561_v8, 4  ;;  %v583_v12 = vrot.slane %v582_v4, 4  ;;  %v604_v42 = vrot.slane %v603_v62, 4  ;;  %v621_v13 = vadd.f32 %v620_v16, %v459_v48 }
  0xdd   :  { %v479_v49 = vadd.f32 %v478_v9, %v477_v31  ;;  %v500_v60 = vadd.f32 %v499_v55, %v498_v25  ;;  %v521_v35 = vadd.f32 %v520_v5, %v519_v26  ;;  %v542_v27 = vadd.f32 %v541_v41, %v540_v44 }
  0xde   :  { %v563_v54 = vadd.f32 %v562_v6, %v561_v8  ;;  %v584_v39 = vadd.f32 %v583_v12, %v582_v4  ;;  %v605_v57 = vadd.f32 %v604_v42, %v603_v62  ;;  %v622_v58 = vadd.f32 %v621_v13, %v460_v30 }
  0xdf   :  { %v480_v40 = vrot.slane %v479_v49, 2  ;;  %v501_v7 = vrot.slane %v500_v60, 2  ;;  %v522_v43 = vrot.slane %v521_v35, 2  ;;  %v543_v3 = vrot.slane %v542_v27, 2 }
  0xe0   :  { %v564_v15 = vrot.slane %v563_v54, 2  ;;  %v585_v14 = vrot.slane %v584_v39, 2  ;;  %v606_v45 = vrot.slane %v605_v57, 2  ;;  %v623_v19 = vadd.f32 %v622_v58, %v461_v11 }
  0xe1   :  { %v481_v46 = vadd.f32 %v480_v40, %v479_v49  ;;  %v502_v20 = vadd.f32 %v501_v7, %v500_v60  ;;  %v523_v21 = vadd.f32 %v522_v43, %v521_v35  ;;  %v544_v22 = vadd.f32 %v543_v3, %v542_v27 }
  0xe2   :  { %v565_v47 = vadd.f32 %v564_v15, %v563_v54  ;;  %v586_v56 = vadd.f32 %v585_v14, %v584_v39  ;;  %v607_v23 = vadd.f32 %v606_v45, %v605_v57  ;;  %v624_v48 = vadd.f32 %v623_v19, %v462_v61 }
  0xe3   :  { %v482_v53 = vrot.slane %v481_v46, 1  ;;  %v503_v24 = vrot.slane %v502_v20, 1  ;;  %v524_v63 = vrot.slane %v523_v21, 1  ;;  %v545_v0 = vrot.slane %v544_v22, 1 }
  0xe4   :  { %v566_v28 = vrot.slane %v565_v47, 1  ;;  %v625_v1 = vrot.slane %v624_v48, 4  ;;  %vm639_vm9 = vcmask 1041409   ;;  %vm641_vm1 = vcmask 1042434  }
  0xe5   :  { %v483_v29 = vadd.f32 %v482_v53, %v481_v46  ;;  %v504_v30 = vadd.f32 %v503_v24, %v502_v20  ;;  %v525_v32 = vadd.f32 %v524_v63, %v523_v21  ;;  %v587_v33 = vrot.slane %v586_v56, 1 }
  0xe6   :  { %v626_v52 = vadd.f32 %v625_v1, %v624_v48  ;;  %vm643_vm14 = vcmask 1043459   ;;  %v546_v2 = vadd.f32 %v545_v0, %v544_v22  ;;  %v608_v34 = vrot.slane %v607_v23, 1 }
  0xe7   :  { %v640_v10 = vsel %vm639_vm9, %v504_v30, %v483_v29  ;;  %vm645_vm11 = vcmask 1044484   ;;  %v567_v59 = vadd.f32 %v566_v28, %v565_v47  ;;  %vm647_vm8 = vcmask 1045509  }
  0xe8   :  { %v627_v11 = vrot.slane %v626_v52, 2  ;;  %v642_v36 = vsel %vm641_vm1, %v525_v32, %v640_v10  ;;  %v588_v51 = vadd.f32 %v587_v33, %v586_v56  ;;  %vm649_vm15 = vcmask 1046534  }
  0xe9   :  { %v644_v37 = vsel %vm643_vm14, %v546_v2, %v642_v36  ;;  %v609_v17 = vadd.f32 %v608_v34, %v607_v23  ;;  %vm651_vm5 = vcmask 1047559  }
  0xea   :  { %v628_v38 = vadd.f32 %v627_v11, %v626_v52  ;;  %v646_v50 = vsel %vm645_vm11, %v567_v59, %v644_v37 }
  0xeb   :  { %v648_v18 = vsel %vm647_vm8, %v588_v51, %v646_v50 }
  0xec   :  { %v629_v61 = vrot.slane %v628_v38, 1  ;;  %v650_v31 = vsel %vm649_vm15, %v609_v17, %v648_v18 }
  0xee   :  { %v630_v25 = vadd.f32 %v629_v61, %v628_v38 }
  0xf0   :  { %v652_v26 = vsel %vm651_vm5, %v630_v25, %v650_v31 }
  0xf1   :  { %654 = vst [vmem:[#allocation2] sm:$0xff] %v652_v26 }
  0xf2   :  { %686 = shalt.err (!%p683_p4)
}
  0xf3   :  { %s687_s18 = scalar_lea.hbm %s1664_s2, 128 }
  0xf4   :  { %p688_p5 = scmp.ne.s32.totalorder %s1664_s2, %s687_s18  ;;  %p691_p6 = scmp.lt.u32.totalorder %s687_s18, %s1664_s2 }
  0xf6   :  { %p693_p7 = pnand %p691_p6, %p688_p5 }
  0xf8   :  { %696 = shalt.err (!%p693_p7)
}
  0xf9   :  { %664 = dma.vmem_to_hbm [thread:$0]  %s662_s1, 128, %s1664_s2, [#allocation3]  }
  0xfa   :  { %697 = dma.done.wait [#allocation3], 128  }
  0xfb   :  { %698 = vsyncadd [#allocation3], 4294967168 }
  0xfc   :  { %668 = vsyncpa [#allocation3], 1 }

</bundles_post_ra>
